<compile_context>
chip_gen: v5e
topology: v5e:2x2
jax: 0.10.0
libtpu: 0.0.40
codegen_flags: <defaults>
</compile_context>

<pallas_src>
import functools

import jax
import jax.numpy as jnp
from jax import lax
from jax.experimental import pallas as pl
from jax.experimental.pallas import tpu as pltpu


def _round_up(x, m):
    return (x + m - 1) // m * m


def _cdiv(x, m):
    return (x + m - 1) // m


def _gap_kernel(x_ref, o_ref, acc_ref, *, hw, tk, k_steps, needs_mask):
    """Per-row partial sums over the spatial (lane) axis.

    Grid: (n_split, row_tiles, k_steps).  Axis 0 splits the spatial range into
    independent halves (parallel); axis 2 is the sequential reduction within a half.

    x_ref:   (TM, TK)   input tile (rows = flattened N*C, cols = spatial chunk)
    o_ref:   (1, TM, 1) f32 partial sum for this (split, row-tile)
    acc_ref: (TM, 1)    f32 running sum, persists across the k axis
    """
    p = pl.program_id(0)
    k = pl.program_id(2)

    @pl.when(k == 0)
    def _():
        acc_ref[...] = jnp.zeros_like(acc_ref)

    if not needs_mask:
        # Every chunk is fully in bounds: widen-into-sum (XLU lane reduce, f32 acc).
        acc_ref[...] += jnp.sum(x_ref[...], axis=-1, keepdims=True, dtype=jnp.float32)
    else:
        # Global column offset of this chunk.  The last real chunk may overhang H*W
        # (mask the garbage lanes); a fully out-of-range chunk contributes nothing.
        start = (p * k_steps + k) * tk
        rem = hw - start

        @pl.when(rem >= tk)
        def _():
            acc_ref[...] += jnp.sum(x_ref[...], axis=-1, keepdims=True,
                                    dtype=jnp.float32)

        @pl.when(jnp.logical_and(rem > 0, rem < tk))
        def _():
            col = lax.broadcasted_iota(jnp.int32, x_ref.shape, 1)
            x = x_ref[...]
            x = jnp.where(col < rem, x, jnp.zeros_like(x))
            acc_ref[...] += jnp.sum(x, axis=-1, keepdims=True, dtype=jnp.float32)

    @pl.when(k == pl.num_programs(2) - 1)
    def _():
        o_ref[...] = acc_ref[...].reshape(o_ref.shape)


def global_average_pooling(feat):
    """feat: (N, C, H, W) -> (N, C); matches F.avg_pool2d(feat, (H, W)).view(-1, C)."""
    N, C, H, W = feat.shape
    rows, hw = N * C, H * W
    dtype_bytes = jnp.dtype(feat.dtype).itemsize
    # Sublane packing granularity: f32 -> 8, bf16/f16 -> 16, int8/fp8 -> 32.
    sub = {1: 32, 2: 16}.get(dtype_bytes, 8)

    # --- row (sublane) tile ---------------------------------------------------------
    # Big enough to amortize per-step overhead, small enough that the "parallel" row
    # axis has >= 2 steps when the problem allows it (megacore).  Never exceeds `rows`
    # (a block dim equal to the full array dim is always legal).
    if rows >= 2 * sub:
        TM = min(256, _round_up(_cdiv(rows, 2), sub))
    else:
        TM = min(256, _round_up(rows, sub))
    TM = min(TM, rows)
    row_tiles = _cdiv(rows, TM)

    # --- spatial (lane) tile ----------------------------------------------------------
    # ~4 MiB per input buffer; with default double buffering this stays well inside
    # v5e's 16 MiB default scoped VMEM (and far below v6e/v7x limits).
    target_bytes = 4 * 1024 * 1024
    tk_cap = max(128, (target_bytes // (TM * dtype_bytes)) // 128 * 128)

    # 2-way spatial split keeps both v7x TensorCores busy when there is only a single
    # row tile; gated on problem size so tiny problems stay on the simplest path.
    n_split = 2 if (row_tiles == 1 and hw >= 2 * 128
                    and rows * hw * dtype_bytes >= (1 << 20)) else 1

    if n_split == 1 and hw <= tk_cap:
        # Common case: whole spatial extent in one lane block -> no pad, no mask,
        # single fully contiguous DMA slab per row tile, k-grid collapses to 1.
        TK = hw
    else:
        TK = min(tk_cap, _round_up(_cdiv(hw, n_split), 128))
    total_k = _cdiv(hw, TK)
    k_steps = _cdiv(total_k, n_split)
    needs_mask = (n_split * k_steps * TK != hw)

    x = feat.reshape(rows, hw)  # row-major layout already; no copy, no pad

    kernel = functools.partial(_gap_kernel, hw=hw, tk=TK, k_steps=k_steps,
                               needs_mask=needs_mask)

    def in_map(p, i, k):
        # Clamp so a fully out-of-range chunk (odd chunk count under the split) just
        # re-reads the last real chunk; the kernel masks it to zero contribution.
        return (i, jnp.minimum(p * k_steps + k, total_k - 1))

    partial_sums = pl.pallas_call(
        kernel,
        out_shape=jax.ShapeDtypeStruct((n_split, rows, 1), jnp.float32),
        grid_spec=pltpu.PrefetchScalarGridSpec(
            num_scalar_prefetch=0,
            grid=(n_split, row_tiles, k_steps),  # reduction (spatial) axis last
            in_specs=[pl.BlockSpec((TM, TK), in_map)],
            # Output block index constant across k -> resident in VMEM, written back
            # to HBM once per (split, row-tile).
            out_specs=pl.BlockSpec((1, TM, 1), lambda p, i, k: (p, i, 0)),
            scratch_shapes=[pltpu.VMEM((TM, 1), jnp.float32)],
        ),
        compiler_params=pltpu.CompilerParams(
            dimension_semantics=("parallel", "parallel", "arbitrary"),
        ),
        cost_estimate=pl.CostEstimate(
            flops=rows * hw,
            transcendentals=0,
            bytes_accessed=rows * hw * dtype_bytes + n_split * rows * 4,
        ),
    )(x)

    # Tiny epilogue on (n_split, rows): combine spatial halves, scale by 1/(H*W), cast.
    sums = jnp.sum(partial_sums[:, :, 0], axis=0)
    return (sums * (1.0 / hw)).astype(feat.dtype).reshape(N, C)


if __name__ == "__main__":
    key = jax.random.PRNGKey(0)
    k1, k2, k3, k4 = jax.random.split(key, 4)

    # Primary shape (matches the PyTorch module's expected NCHW input).
    feat = jax.random.normal(k1, (2, 4, 16, 16), dtype=jnp.float32)
    out = jax.block_until_ready(global_average_pooling(feat))
    ref = jnp.mean(feat, axis=(2, 3))
    assert out.shape == (2, 4)
    assert jnp.allclose(out, ref, atol=1e-5, rtol=1e-5)

    # Ragged dims: full-array blocks with non-(8,128)-aligned sizes, zero padding work.
    feat2 = jax.random.normal(k2, (2, 3, 9, 17), dtype=jnp.float32)
    out2 = jax.block_until_ready(global_average_pooling(feat2))
    ref2 = jnp.mean(feat2, axis=(2, 3))
    assert out2.shape == (2, 3)
    assert jnp.allclose(out2, ref2, atol=1e-5, rtol=1e-5)

    # Small N*C, large ragged H*W: exercises the 2-way spatial split (v7x dual-TC path)
    # and the in-kernel lane mask on the overhanging spatial chunk.
    feat3 = jax.random.normal(k3, (2, 4, 257, 257), dtype=jnp.float32)
    out3 = jax.block_until_ready(global_average_pooling(feat3))
    ref3 = jnp.mean(feat3, axis=(2, 3))
    assert out3.shape == (2, 4)
    assert jnp.allclose(out3, ref3, atol=1e-4, rtol=1e-4)

    # bf16 input: native-dtype HBM loads, f32 accumulation, single final cast.
    feat4 = jax.random.normal(k4, (2, 4, 16, 16), dtype=jnp.bfloat16)
    out4 = jax.block_until_ready(global_average_pooling(feat4))
    ref4 = jnp.mean(feat4.astype(jnp.float32), axis=(2, 3)).astype(jnp.bfloat16)
    assert out4.shape == (2, 4)
    assert jnp.allclose(out4.astype(jnp.float32), ref4.astype(jnp.float32),
                        atol=2e-2, rtol=2e-2)

    print("KERNEL_OK")
</pallas_src>

<mosaic_0001>
module attributes {stable_mosaic.version = 11 : i64} {
  func.func @_gap_kernel(%arg0: i32, %arg1: i32, %arg2: i32, %arg3: memref<8x256xf32, #tpu.memory_space<vmem>>, %arg4: memref<1x8x1xf32, #tpu.memory_space<vmem>>, %arg5: memref<8x1xf32, #tpu.memory_space<vmem>>) attributes {dimension_semantics = [#tpu.dimension_semantics<parallel>, #tpu.dimension_semantics<parallel>, #tpu.dimension_semantics<arbitrary>], iteration_bounds = array<i64: 1, 1, 1>, scalar_prefetch = 0 : i64, scratch_operands = 1 : i64, tpu.core_type = #tpu.core_type<tc>, window_params = [{transform_indices = @transform_0, window_bounds = array<i64: 8, 256>}, {transform_indices = @transform_1, window_bounds = array<i64: 1, 8, 1>}]} {
    %c0_i32 = arith.constant 0 : i32
    %0 = arith.cmpi eq, %arg2, %c0_i32 : i32
    %1 = arith.extui %0 : i1 to i32
    %c0_i32_0 = arith.constant 0 : i32
    %2 = arith.cmpi ne, %1, %c0_i32_0 : i32
    scf.if %2 {
      %cst_8 = arith.constant 0.000000e+00 : f32
      %12 = vector.broadcast %cst_8 : f32 to vector<8x1xf32>
      %c0_9 = arith.constant 0 : index
      %c0_10 = arith.constant 0 : index
      %13 = vector.load %arg5[%c0_9, %c0_10] : memref<8x1xf32, #tpu.memory_space<vmem>>, vector<8x1xf32>
      tpu.vector_store %arg5[%c0_9, %c0_10], %12 {strides = array<i32>} : memref<8x1xf32, #tpu.memory_space<vmem>>, vector<8x1xf32>,
    } else {
    }
    %c0 = arith.constant 0 : index
    %c0_1 = arith.constant 0 : index
    %3 = vector.load %arg5[%c0, %c0_1] : memref<8x1xf32, #tpu.memory_space<vmem>>, vector<8x1xf32>
    %c0_2 = arith.constant 0 : index
    %c0_3 = arith.constant 0 : index
    %4 = vector.load %arg3[%c0_2, %c0_3] : memref<8x256xf32, #tpu.memory_space<vmem>>, vector<8x256xf32>
    %cst = arith.constant dense<0.000000e+00> : vector<8xf32>
    %5 = vector.multi_reduction <add>, %4, %cst [1] : vector<8x256xf32> to vector<8xf32>
    %6 = vector.shape_cast %5 : vector<8xf32> to vector<8x1xf32>
    %7 = arith.addf %3, %6 : vector<8x1xf32>
    %c0_4 = arith.constant 0 : index
    %c0_5 = arith.constant 0 : index
    %8 = vector.load %arg5[%c0_4, %c0_5] : memref<8x1xf32, #tpu.memory_space<vmem>>, vector<8x1xf32>
    tpu.vector_store %arg5[%c0_4, %c0_5], %7 {strides = array<i32>} : memref<8x1xf32, #tpu.memory_space<vmem>>, vector<8x1xf32>,
    %c0_i32_6 = arith.constant 0 : i32
    %9 = arith.cmpi eq, %arg2, %c0_i32_6 : i32
    %10 = arith.extui %9 : i1 to i32
    %c0_i32_7 = arith.constant 0 : i32
    %11 = arith.cmpi ne, %10, %c0_i32_7 : i32
    scf.if %11 {
      %c0_8 = arith.constant 0 : index
      %c0_9 = arith.constant 0 : index
      %12 = vector.load %arg5[%c0_8, %c0_9] : memref<8x1xf32, #tpu.memory_space<vmem>>, vector<8x1xf32>
      %13 = vector.shape_cast %12 : vector<8x1xf32> to vector<1x8x1xf32>
      %c0_10 = arith.constant 0 : index
      %c0_11 = arith.constant 0 : index
      %c0_12 = arith.constant 0 : index
      %14 = vector.load %arg4[%c0_10, %c0_11, %c0_12] : memref<1x8x1xf32, #tpu.memory_space<vmem>>, vector<1x8x1xf32>
      tpu.vector_store %arg4[%c0_10, %c0_11, %c0_12], %13 {strides = array<i32>} : memref<1x8x1xf32, #tpu.memory_space<vmem>>, vector<1x8x1xf32>,
    } else {
    }
    return
  }
  func.func @transform_0(%arg0: i32, %arg1: i32, %arg2: i32) -> (i32, i32) {
    %c1_i32 = arith.constant 1 : i32
    %0 = arith.muli %arg0, %c1_i32 : i32
    %1 = arith.addi %0, %arg2 : i32
    %c0_i32 = arith.constant 0 : i32
    %2 = arith.minsi %1, %c0_i32 : i32
    %c0_i32_0 = arith.constant 0 : i32
    return %arg1, %2 : i32, i32
  }
  func.func @transform_1(%arg0: i32, %arg1: i32, %arg2: i32) -> (i32, i32, i32) {
    %c0_i32 = arith.constant 0 : i32
    %c0_i32_0 = arith.constant 0 : i32
    return %arg0, %arg1, %c0_i32 : i32, i32, i32
  }
}

</mosaic_0001>

<bundles_post_ra>
// kernel: tpu_custom_call.1
= control target key start
LH: loop header
LB: loop body
LE: loop exit
PB: predicated region body
PF: predicated region fallthrough
CT: control target
= control target key end

     0   :  { %6 = vsyncpa [#allocation4], 0  ;;  %s87_s9 = smov [#allocation3]   ;;  %s105_s0 = inlined_call_operand.hbm [shape: f32[8,256], index: 0, kind: input, shape index: {}]   ;;  %s106_s1 = inlined_call_operand.vmem [shape: f32[1,8,1], index: 1, kind: output, shape index: {}]  }
   0x1   :  { %s18_s8 = sshll.u32 %s105_s0, 4  ;;  %s20_s10 = sshll.u32 %s87_s9, 4  ;;  %s19_s8 = int_to_ptr.hbm [resolvable:$true] %s18_s8  ;;  %s21_s10 = int_to_ptr.vmem [resolvable:$true] %s20_s10 }
   0x2   :  { %23 = dma.hbm_to_vmem [thread:$0]  %s19_s8, 256, %s21_s10, [#allocation4]  }
   0x3   :  { %85 = dma.done.wait [#allocation4], 256  }
   0x4   :  { %86 = vsyncadd [#allocation4], 4294967040  ;;  %vm36_vm0 = vcmask 7168   ;;  %v88_v0 = vmov 0.0   ;;  %v39_v1 = vld [vmem:[#allocation3] sm:$0xff]  ;;  %v40_v2 = vld [vmem:[#allocation3 + $0x8] sm:$0xff] }
   0x5   :  { %37 = vst.msk [vmem:[#allocation2] sm:$0xff] %vm36_vm0, %v88_v0  ;;  %v41_v3 = vadd.f32 %v40_v2, %v39_v1 }
   0x7   :  { %42 = vadd.xlane.f32.xlu0 %v41_v3 }
   0xc   :  { %v38_v4 = vld [vmem:[#allocation2] sm:$0xff] }
  0x7a   :  { %v43_v5 = vpop.xlane.xlu0 %42 }
  0x7b   :  { %v44_v6 = vadd.f32 %v43_v5, %v38_v4 }
  0x7d   :  { %46 = vst.msk [vmem:[#allocation2] sm:$0xff] %vm36_vm0, %v44_v6 }
  0x84   :  { %v50_v7 = vld [vmem:[#allocation2] sm:$0xff] }
  0x85   :  { %51 = vst.msk [vmem:[%s106_s1] sm:$0xff] %vm36_vm0, %v50_v7 }
  0x86   :  { %56 = vsyncpa [#allocation4], 1 }

</bundles_post_ra>
